<compile_context>
chip_gen: v7x
topology: tpu7x:2x2x1
jax: 0.10.0
libtpu: 0.0.40
codegen_flags: <defaults>
</compile_context>

<pallas_src>
import functools

import jax
import jax.numpy as jnp
from jax.experimental import pallas as pl
from jax.experimental.pallas import tpu as pltpu


def _round_up(x, m):
    return ((x + m - 1) // m) * m


def regression_head_kernel(x_ref, w1_ref, b1_ref, w2_ref, b2_ref, o_ref):
    # x: [tm, H]; w1: [H, H]; b1: [1, H] f32; w2: [H, L_pad]; b2: [1, L_pad] f32
    # dropout (eval mode) -> identity
    x = x_ref[...].astype(w1_ref.dtype)           # cheap VPU cast -> native-dtype MXU
    h = jnp.dot(x, w1_ref[...], preferred_element_type=jnp.float32)
    h = h + b1_ref[...]                           # f32 bias add (VPU)
    h = jnp.tanh(h)                               # f32 tanh (EUP), safe on v5e
    # dropout (eval mode) -> identity
    h = h.astype(w2_ref.dtype)                    # keep 2nd matmul on bf16 MXU path
    out = jnp.dot(h, w2_ref[...], preferred_element_type=jnp.float32)
    out = out + b2_ref[...]
    o_ref[...] = out.astype(o_ref.dtype)          # lane-dense (128-multiple) store


def pack_params(w_dense, b_dense, w_out, b_out, *, param_dtype=None):
    """One-time parameter packing; call once and reuse for every forward.

    w_dense: [H, H] (stored [in, out]);  b_dense: [H]
    w_out:   [H, L] (stored [in, out]);  b_out:   [L]
    param_dtype: optional narrow dtype (e.g. jnp.bfloat16) for the weights on
      v5e/v6e/v7x. Note: activations are also quantized to this dtype inside
      the kernel (both matmul operands must match for the fast MXU path);
      biases, accumulation and the tanh epilogue stay in f32.
    """
    H = w_dense.shape[0]
    L = w_out.shape[1]
    L_pad = _round_up(max(L, 1), 128)             # lane-dense output -> unmasked vst

    w1 = w_dense if param_dtype is None else w_dense.astype(param_dtype)
    w2 = w_out if param_dtype is None else w_out.astype(param_dtype)
    w2 = jnp.pad(w2, ((0, 0), (0, L_pad - L)))
    b1 = b_dense.astype(jnp.float32).reshape(1, H)
    b2 = jnp.pad(b_out.astype(jnp.float32).reshape(1, L),
                 ((0, 0), (0, L_pad - L)))
    return {"w_dense": w1, "b_dense": b1, "w_out": w2, "b_out": b2,
            "num_labels": L}


def regression_head(features, packed, *, block_m=512, min_batch_grid=2):
    """features: [B, H] -> [B, num_labels]  (eval-mode RegressionHead forward)."""
    B, H = features.shape
    w1, b1, w2, b2 = (packed["w_dense"], packed["b_dense"],
                      packed["w_out"], packed["b_out"])
    L = packed["num_labels"]
    L_pad = w2.shape[1]
    out_dtype = features.dtype

    # Batch tile: multiple of 8 sublanes, <= block_m; additionally capped so the
    # batch grid has >= min_batch_grid steps when B allows it (v7x megacore gets
    # both TCs busy; v5e/v6e only pay one extra ~0.35 us grid step).
    tm = min(block_m, _round_up(B, 8))
    if min_batch_grid > 1 and B > 8:
        tm = min(tm, _round_up(pl.cdiv(B, min_batch_grid), 8))
    grid = (pl.cdiv(B, tm),)

    # Explicit VMEM budget: single-buffered resident weights + double-buffered
    # x/out tiles + margin; capped with headroom below v7x's 64 MiB per TC.
    wbytes = w1.dtype.itemsize
    weights_b = H * H * wbytes + H * L_pad * wbytes + (H + L_pad) * 4
    tiles_b = (2 * tm * H * features.dtype.itemsize
               + 2 * tm * L_pad * jnp.zeros((), out_dtype).dtype.itemsize)
    vmem_limit = int(min(weights_b + tiles_b + (8 << 20), 56 << 20))

    # Constant-index (resident) blocks: fetched once, single buffer.
    resident = functools.partial(pl.BlockSpec, index_map=lambda i: (0, 0),
                                 pipeline_mode=pl.Buffered(1))

    out = pl.pallas_call(
        regression_head_kernel,
        out_shape=jax.ShapeDtypeStruct((B, L_pad), out_dtype),
        grid=grid,
        in_specs=[
            pl.BlockSpec((tm, H), lambda i: (i, 0)),   # x: streamed over batch
            resident((H, H)),                          # dense W (resident)
            resident((1, H)),                          # dense b (f32)
            resident((H, L_pad)),                      # out_proj W (lane-padded)
            resident((1, L_pad)),                      # out_proj b (lane-padded, f32)
        ],
        out_specs=pl.BlockSpec((tm, L_pad), lambda i: (i, 0)),
        compiler_params=pltpu.CompilerParams(
            dimension_semantics=("parallel",),         # megacore sharding on v7x
            vmem_limit_bytes=vmem_limit,
        ),
    )(features, w1, b1, w2, b2)

    return out[:B, :L]


def _ref(features, w_dense, b_dense, w_out, b_out):
    """Pure-JAX reference of the PyTorch forward (eval mode)."""
    h = jnp.tanh(features @ w_dense + b_dense)
    return h @ w_out + b_out


if __name__ == "__main__":
    # Small synthetic config: hidden_size=128 (one lane tile), num_labels=4, batch=16.
    B, H, L = 16, 128, 4
    key = jax.random.PRNGKey(0)
    k_x, k_w1, k_b1, k_w2, k_b2 = jax.random.split(key, 5)

    # Deterministic "PyTorch-like" init: uniform(-1/sqrt(fan_in), 1/sqrt(fan_in)).
    lim = 1.0 / jnp.sqrt(jnp.float32(H))
    features = jax.random.normal(k_x, (B, H), dtype=jnp.float32)
    w_dense = jax.random.uniform(k_w1, (H, H), jnp.float32, -lim, lim)  # [in, out]
    b_dense = jax.random.uniform(k_b1, (H,), jnp.float32, -lim, lim)
    w_out = jax.random.uniform(k_w2, (H, L), jnp.float32, -lim, lim)    # [in, out]
    b_out = jax.random.uniform(k_b2, (L,), jnp.float32, -lim, lim)

    ref = jax.block_until_ready(_ref(features, w_dense, b_dense, w_out, b_out))

    # f32-weight path. (Tolerance allows for MXU bf16-pass f32 matmuls in either
    # the kernel or the XLA reference.)
    packed_f32 = pack_params(w_dense, b_dense, w_out, b_out)
    out = jax.block_until_ready(regression_head(features, packed_f32))
    assert out.shape == (B, L)
    assert jnp.allclose(out, ref, atol=2e-3, rtol=2e-3), "f32 mismatch vs reference"

    # bf16 weights + activations (native MXU path on v5e/v6e/v7x); f32 accumulation.
    packed_bf16 = pack_params(w_dense, b_dense, w_out, b_out,
                              param_dtype=jnp.bfloat16)
    out_bf16 = jax.block_until_ready(regression_head(features, packed_bf16))
    assert out_bf16.shape == (B, L)
    assert jnp.allclose(out_bf16, ref, atol=5e-2, rtol=5e-2), "bf16 mismatch vs reference"

    print("KERNEL_OK")
</pallas_src>

<mosaic_0001>
module attributes {stable_mosaic.version = 11 : i64} {
  func.func @regression_head_kernel(%arg0: i32, %arg1: memref<8x128xf32, #tpu.memory_space<vmem>>, %arg2: memref<128x128xf32, #tpu.memory_space<vmem>>, %arg3: memref<1x128xf32, #tpu.memory_space<vmem>>, %arg4: memref<128x128xf32, #tpu.memory_space<vmem>>, %arg5: memref<1x128xf32, #tpu.memory_space<vmem>>, %arg6: memref<8x128xf32, #tpu.memory_space<vmem>>) attributes {dimension_semantics = [#tpu.dimension_semantics<parallel>], iteration_bounds = array<i64: 2>, scalar_prefetch = 0 : i64, scratch_operands = 0 : i64, tpu.core_type = #tpu.core_type<tc>, window_params = [{transform_indices = @transform_0, window_bounds = array<i64: 8, 128>}, {pipeline_mode = #tpu.pipeline_mode<synchronous>, transform_indices = @transform_1, window_bounds = array<i64: 128, 128>}, {pipeline_mode = #tpu.pipeline_mode<synchronous>, transform_indices = @transform_2, window_bounds = array<i64: 1, 128>}, {pipeline_mode = #tpu.pipeline_mode<synchronous>, transform_indices = @transform_3, window_bounds = array<i64: 128, 128>}, {pipeline_mode = #tpu.pipeline_mode<synchronous>, transform_indices = @transform_4, window_bounds = array<i64: 1, 128>}, {transform_indices = @transform_5, window_bounds = array<i64: 8, 128>}]} {
    %c0 = arith.constant 0 : index
    %c0_0 = arith.constant 0 : index
    %0 = vector.load %arg1[%c0, %c0_0] : memref<8x128xf32, #tpu.memory_space<vmem>>, vector<8x128xf32>
    %c0_1 = arith.constant 0 : index
    %c0_2 = arith.constant 0 : index
    %1 = vector.load %arg2[%c0_1, %c0_2] : memref<128x128xf32, #tpu.memory_space<vmem>>, vector<128x128xf32>
    %cst = arith.constant dense<0.000000e+00> : vector<8x128xf32>
    %2 = tpu.matmul %0, %1, %cst {dimension_numbers = #tpu.dot_dimension_numbers<[1], [0], [0], [1], [0, 0, 1, 1], [], []>} : vector<8x128xf32>, vector<128x128xf32>, vector<8x128xf32> -> vector<8x128xf32>
    %c0_3 = arith.constant 0 : index
    %c0_4 = arith.constant 0 : index
    %3 = vector.load %arg3[%c0_3, %c0_4] : memref<1x128xf32, #tpu.memory_space<vmem>>, vector<1x128xf32>
    %4 = vector.broadcast %3 : vector<1x128xf32> to vector<8x128xf32>
    %5 = arith.addf %2, %4 : vector<8x128xf32>
    %6 = math.tanh %5 : vector<8x128xf32>
    %c0_5 = arith.constant 0 : index
    %c0_6 = arith.constant 0 : index
    %7 = vector.load %arg4[%c0_5, %c0_6] : memref<128x128xf32, #tpu.memory_space<vmem>>, vector<128x128xf32>
    %cst_7 = arith.constant dense<0.000000e+00> : vector<8x128xf32>
    %8 = tpu.matmul %6, %7, %cst_7 {dimension_numbers = #tpu.dot_dimension_numbers<[1], [0], [0], [1], [0, 0, 1, 1], [], []>} : vector<8x128xf32>, vector<128x128xf32>, vector<8x128xf32> -> vector<8x128xf32>
    %c0_8 = arith.constant 0 : index
    %c0_9 = arith.constant 0 : index
    %9 = vector.load %arg5[%c0_8, %c0_9] : memref<1x128xf32, #tpu.memory_space<vmem>>, vector<1x128xf32>
    %10 = vector.broadcast %9 : vector<1x128xf32> to vector<8x128xf32>
    %11 = arith.addf %8, %10 : vector<8x128xf32>
    %c0_10 = arith.constant 0 : index
    %c0_11 = arith.constant 0 : index
    %12 = vector.load %arg6[%c0_10, %c0_11] : memref<8x128xf32, #tpu.memory_space<vmem>>, vector<8x128xf32>
    tpu.vector_store %arg6[%c0_10, %c0_11], %11 {strides = array<i32>} : memref<8x128xf32, #tpu.memory_space<vmem>>, vector<8x128xf32>,
    return
  }
  func.func @transform_0(%arg0: i32) -> (i32, i32) {
    %c0_i32 = arith.constant 0 : i32
    %c0_i32_0 = arith.constant 0 : i32
    return %arg0, %c0_i32 : i32, i32
  }
  func.func @transform_1(%arg0: i32) -> (i32, i32) {
    %c0_i32 = arith.constant 0 : i32
    %c0_i32_0 = arith.constant 0 : i32
    %c0_i32_1 = arith.constant 0 : i32
    return %c0_i32, %c0_i32_0 : i32, i32
  }
  func.func @transform_2(%arg0: i32) -> (i32, i32) {
    %c0_i32 = arith.constant 0 : i32
    %c0_i32_0 = arith.constant 0 : i32
    %c0_i32_1 = arith.constant 0 : i32
    return %c0_i32, %c0_i32_0 : i32, i32
  }
  func.func @transform_3(%arg0: i32) -> (i32, i32) {
    %c0_i32 = arith.constant 0 : i32
    %c0_i32_0 = arith.constant 0 : i32
    %c0_i32_1 = arith.constant 0 : i32
    return %c0_i32, %c0_i32_0 : i32, i32
  }
  func.func @transform_4(%arg0: i32) -> (i32, i32) {
    %c0_i32 = arith.constant 0 : i32
    %c0_i32_0 = arith.constant 0 : i32
    %c0_i32_1 = arith.constant 0 : i32
    return %c0_i32, %c0_i32_0 : i32, i32
  }
  func.func @transform_5(%arg0: i32) -> (i32, i32) {
    %c0_i32 = arith.constant 0 : i32
    %c0_i32_0 = arith.constant 0 : i32
    return %arg0, %c0_i32 : i32, i32
  }
}

</mosaic_0001>

<bundles_post_ra>
// kernel: tpu_custom_call.1
= control target key start
LH: loop header
LB: loop body
LE: loop exit
PB: predicated region body
PF: predicated region fallthrough
CT: control target
= control target key end

     0   :  { %10 = vsyncpa [#allocation3], 0  ;;  %s1260_s0 = inlined_call_operand.hbm [shape: f32[16,128], index: 0, kind: input, shape index: {}]   ;;  %s1261_s1 = inlined_call_operand.hbm [shape: f32[128,128], index: 1, kind: input, shape index: {}]   ;;  %s1262_s2 = inlined_call_operand.vmem [shape: f32[1,128], index: 2, kind: input, shape index: {}]   ;;  %s1263_s3 = inlined_call_operand.hbm [shape: f32[128,128], index: 3, kind: input, shape index: {}]   ;;  %s1264_s4 = inlined_call_operand.vmem [shape: f32[1,128], index: 4, kind: input, shape index: {}]   ;;  %s1265_s5 = inlined_call_operand.hbm [shape: f32[16,128], index: 5, kind: output, shape index: {}]  }
   0x1   :  { %12 = vsyncpa [#allocation3 + $0x1], 0 }
   0x2   :  { %13 = vsyncpa [#allocation6], 0 }
   0x3   :  { %14 = vsyncpa [#allocation4], 0 }
   0x4   :  { %16 = vsyncpa [#allocation4 + $0x1], 0  ;;  %s1002_s18 = smov 0   ;;  %s1004_s19 = smov 0  }
   0x5   :  { %s1006_s20 = smov 0   ;;  %s1008_s21 = smov 0  }
   0x6 LB: > { %s1023_s22 = sadd.s32 4294967295, %s961_s21   ;;  %s561_s23 = sadd.s32 4294967294, %s961_s21   ;;  %s961_s21 = sphi %s1008_s21, %s1285_s21   ;;  %s957_s20 = sphi %s1006_s20, %s1284_s20   ;;  %s953_s19 = sphi %s1004_s19, %s1283_s19   ;;  %s949_s18 = sphi %s1002_s18, %s1282_s18  }
   0x7   : > { %p42_p0 = scmp.ne.s32.totalorder %s953_s19, %s949_s18  ;;  %p1266_p1 = scmp.eq.s32.totalorder %s1023_s22, 0 }
   0x8   : > { %p156_p3 = scmp.eq.s32.totalorder %s561_s23, 1  ;;  %p562_p5 = scmp.ge.s32.totalorder %s961_s21, 1 }
   0x9   : > { %p1032_p4 = por %p1266_p1, %p42_p0  ;;  %p163_p7 = scmp.lt.s32.totalorder %s961_s21, 3 }
   0xa   : > { %p1037_p6 = por %p156_p3, %p42_p0  ;;  %s963_s27 = smov [#allocation5]  }
   0xb   : > { %s1269_s24 = scalar_select %p1032_p4, 1, 0 }
   0xc   : > { %s1270_s25 = scalar_select %p1037_p6, 1, 0 }
   0xd   : > { %p1042_p8 = pnand %p562_p5, %p163_p7  ;;  %s175_s28 = sshll.u32 %s963_s27, 4  ;;  %s1046_s28 = int_to_ptr.vmem [resolvable:$true] %s175_s28 }
   0xe   : > { %s964_s30 = smov [#allocation7]   ;;  %s805_s9 = scalar_lea.hbm %s1261_s1, 2048 }
   0xf   : > { %p743_p9 = pneg %p1042_p8  ;;  %s191_s6 = sshll.u32 %s964_s30, 4  ;;  %s1057_s6 = int_to_ptr.vmem [resolvable:$true] %s191_s6 }
  0x10   : > { %p806_p12 = scmp.ne.s32.totalorder %s1261_s1, %s805_s9  ;;  %p812_p5 = scmp.lt.u32.totalorder %s805_s9, %s1261_s1 }
  0x11   : > { %p1053_p11 = pnand %p743_p9, %p1266_p1 }
  0x13   : > { %p807_p13 = pneg %p1053_p11 }
  0x15   : > { %p808_p0 = pnand %p807_p13, %p806_p12 }
  0x17   : > { %p809_p3 = pneg %p808_p0 }
  0x19   : > { %p814_p7 = pnand %p812_p5, %p809_p3 }
  0x1b   : > { %817 = shalt.err (!%p814_p7)
}
  0x1c   : > { %s818_s14 = scalar_lea.vmem %s1046_s28, 2048  ;;  %p826_p2 = scmp.lt.s32.totalorder %s1046_s28, %s1046_s28 }
  0x1d   : > { %p819_p9 = scmp.ne.s32.totalorder %s1046_s28, %s818_s14  ;;  %p827_p12 = scmp.lt.s32.totalorder %s818_s14, %s818_s14 }
  0x1f   : > { %p821_p10 = pnand %p819_p9, %p807_p13  ;;  %p828_p0 = por %p827_p12, %p826_p2 }
  0x21   : > { %p822_p1 = pneg %p821_p10 }
  0x23   : > { %p829_p6 = pnand %p828_p0, %p822_p1 }
  0x25   : > { %832 = shalt.err (!%p829_p6)
}
  0x26   : > { %s965_s15 = smov 128   ;;  %s966_s16 = smov 8  }
  0x27   : > { %746 = dma.hbm_to_vmem [thread:$0]  (!%p1053_p11), %s1261_s1, 2048, %s1046_s28, [#allocation6], %s965_s15, %s965_s15, %s966_s16  }
  0x28   : > { %s833_s7 = scalar_lea.hbm %s1263_s3, 2048 }
  0x29   : > { %p834_p2 = scmp.ne.s32.totalorder %s1263_s3, %s833_s7  ;;  %p840_p10 = scmp.lt.u32.totalorder %s833_s7, %s1263_s3 }
  0x2b   : > { %p836_p1 = pnand %p834_p2, %p807_p13 }
  0x2d   : > { %p837_p6 = pneg %p836_p1 }
  0x2f   : > { %p842_p3 = pnand %p840_p10, %p837_p6 }
  0x31   : > { %845 = shalt.err (!%p842_p3)
}
  0x32   : > { %s846_s28 = scalar_lea.vmem %s1057_s6, 2048  ;;  %p854_p12 = scmp.lt.s32.totalorder %s1057_s6, %s1057_s6 }
  0x33   : > { %p847_p5 = scmp.ne.s32.totalorder %s1057_s6, %s846_s28  ;;  %p855_p0 = scmp.lt.s32.totalorder %s846_s28, %s846_s28 }
  0x35   : > { %p849_p7 = pnand %p847_p5, %p807_p13  ;;  %p856_p2 = por %p855_p0, %p854_p12 }
  0x37   : > { %p850_p9 = pneg %p849_p7 }
  0x39   : > { %p857_p1 = pnand %p856_p2, %p850_p9 }
  0x3b   : > { %860 = shalt.err (!%p857_p1)
}
  0x3c   : > { %749 = dma.hbm_to_vmem [thread:$0]  (!%p1053_p11), %s1263_s3, 2048, %s1057_s6, [#allocation6], %s965_s15, %s965_s15, %s966_s16  }
  0x3d   : > { %s1112_s14 = sadd.s32 1, %s961_s21   ;;  %s29_s29 = sadd.s32 1, %s957_s20 }
  0x3e   : > { %s26_s17 = ssub.s32 %s961_s21, %s1112_s14  ;;  %p36_p13 = scmp.ne.s32.totalorder %s957_s20, %s953_s19 }
  0x3f   : > { %p27_p6 = scmp.eq.s32.totalorder %s26_s17, 0  ;;  %p37_p10 = scmp.eq.s32.totalorder %s961_s21, 0 }
  0x40   : > { %p1273_p3 = scmp.eq.s32.totalorder %s1023_s22, 1  ;;  %p760_p7 = scmp.lt.s32.totalorder %s961_s21, 2 }
  0x41   : > { %s1128_s27 = scalar_select %p27_p6, %s957_s20, %s29_s29  }
  0x42   : > { %p1122_p5 = por %p1273_p3, %p36_p13  ;;  %p38_p9 = por %p37_p10, %p36_p13 }
  0x43   : > { %s208_s30 = sand.u32 1, %s957_s20   ;;  %s567_s6 = sshll.u32 %s961_s21, 7 }
  0x44   : > { %s1274_s23 = scalar_select %p1122_p5, 1, 0 }
  0x45   : > { %s566_s7 = sshll.u32 %s208_s30, 3  ;;  %s1135_s8 = scalar_lea.hbm %s1260_s0, %s567_s6 }
  0x46   : > { %s212_s9 = scalar_lea.vmem [#allocation2], %s566_s7  ;;  %p1139_p11 = pnand %p760_p7, %p38_p9 }
  0x47   : > { %s219_s10 = sshll.u32 %s212_s9, 4  ;;  %s209_s28 = scalar_lea.sflag [#allocation3], %s208_s30  ;;  %s1137_s10 = int_to_ptr.vmem [resolvable:$true] %s219_s10 }
  0x48   : > { %s861_s12 = scalar_lea.hbm %s1135_s8, 128  ;;  %p863_p0 = pneg %p1139_p11 }
  0x49   : > { %p862_p12 = scmp.ne.s32.totalorder %s1135_s8, %s861_s12  ;;  %s866_s17 = scalar_lea.hbm %s1260_s0, 256 }
  0x4a   : > { %p867_p13 = scmp.lt.u32.totalorder %s1135_s8, %s1260_s0  ;;  %p868_p6 = scmp.lt.u32.totalorder %s866_s17, %s861_s12 }
  0x4b   : > { %p864_p2 = pnand %p863_p0, %p862_p12  ;;  %p870_p3 = scmp.lt.u32.totalorder %s861_s12, %s1135_s8 }
  0x4c   : > { %p869_p10 = por %p868_p6, %p867_p13 }
  0x4d   : > { %p865_p1 = pneg %p864_p2 }
  0x4e   : > { %p871_p7 = por %p870_p3, %p869_p10 }
  0x50   : > { %p872_p9 = pnand %p871_p7, %p865_p1 }
  0x52   : > { %875 = shalt.err (!%p872_p9)
}
  0x53   : > { %s876_s30 = scalar_lea.vmem %s1137_s10, 128  ;;  %s967_s15 = smov [#allocation2]  }
  0x54   : > { %p877_p12 = scmp.ne.s32.totalorder %s1137_s10, %s876_s30  ;;  %s881_s16 = sshll.u32 %s967_s15, 4  ;;  %s882_s16 = int_to_ptr.vmem [resolvable:$false] %s881_s16 }
  0x55   : > { %s883_s9 = scalar_lea.vmem %s882_s16, 256  ;;  %p884_p4 = scmp.lt.s32.totalorder %s1137_s10, %s882_s16 }
  0x56   : > { %p879_p2 = pnand %p877_p12, %p863_p0  ;;  %p885_p13 = scmp.lt.s32.totalorder %s883_s9, %s876_s30 }
  0x58   : > { %p880_p5 = pneg %p879_p2  ;;  %p886_p6 = por %p885_p13, %p884_p4 }
  0x5a   : > { %p887_p10 = pnand %p886_p6, %p880_p5 }
  0x5c   : > { %890 = shalt.err (!%p887_p10)
}
  0x5d   : > { %753 = dma.hbm_to_vmem [thread:$0]  (!%p1139_p11), %s1135_s8, 128, %s1137_s10, %s209_s28  }
  0x5e   : > { %228 = sbr.rel (%p1042_p8) target bundleno = 592 (0x250), region = 40  ;;  %s1171_s12 = sand.u32 (!%p1042_p8), 1, %s953_s19  }
  0x5f   : > { %s569_s13 = sshll.u32 (!%p1042_p8), %s1171_s12, 3  ;;  %s231_s29 = scalar_lea.sflag (!%p1042_p8), [#allocation3], %s1171_s12 }
  0x60   : > { %s1177_s17 = scalar_lea.vmem (!%p1042_p8), [#allocation2], %s569_s13  ;;  %p1276_p4 = scmp.ne.s32.totalorder (!%p1042_p8), %s1269_s24, 0 }
  0x65   : > { %936 = dma.done.wait (%p1276_p4), %s231_s29, 128  }
  0x66   : > { %938 = vsyncadd (%p1276_p4), %s231_s29, 4294967168  ;;  %p1277_p5 = scmp.eq.s32.totalorder %s1023_s22, 0 }
  0x68   : > { %940 = dma.done.wait (%p1277_p5), [#allocation6], 4096   ;;  %p1278_p8 = pmov %p1277_p5 }
  0x69   : > { %v968_v0 = vmov 0.0|0.0   ;;  %vm969_vm0 = vmmov 0   ;;  %v970_v1 = vmov 0.0   ;;  %v270_v2 = vld [vmem:[#allocation5] sm:$0xff]  ;;  %v271_v3 = vld [vmem:[#allocation5 + $0x8] sm:$0xff]  ;;  %v272_v4 = vld [vmem:[#allocation5 + $0x10] sm:$0xff] }
  0x6a   : > { %942 = vsyncadd (%p1278_p8), [#allocation6], 4294963200  ;;  %683 = vmatprep.subr.bf16.mxu0 %v968_v0  ;;  %645 = vmatprep.mubr.msk.f32.mxu0 %vm969_vm0, %v970_v1  ;;  %v684_v5 = vpack.c.bf16 %v271_v3, %v270_v2  ;;  %v273_v6 = vld [vmem:[#allocation5 + $0x18] sm:$0xff]  ;;  %v274_v8 = vld [vmem:[#allocation5 + $0x20] sm:$0xff]  ;;  %s576_s11 = sshll.u32 %s1023_s22, 7  ;;  %s268_s28 = scalar_lea.vmem [#allocation8], %s569_s13 }
  0x6b   : > { %707 = vmatprep.subr.bf16.mxu1 %v968_v0  ;;  %680 = vmatprep.mubr.msk.f32.mxu1 %vm969_vm0, %v970_v1  ;;  %v687_v7 = vpack.c.bf16 %v273_v6, %v272_v4  ;;  %v275_v9 = vld [vmem:[#allocation5 + $0x28] sm:$0xff]  ;;  %v364_v10 = vld [vmem:[#allocation7] sm:$0xff]  ;;  %v366_v12 = vld [vmem:[#allocation7 + $0x10] sm:$0xff]  ;;  %s472_s7 = sshll.u32 %s268_s28, 4  ;;  %s1216_s15 = scalar_lea.hbm %s1265_s5, %s576_s11  ;;  %s1218_s7 = int_to_ptr.vmem [resolvable:$true] %s472_s7 }
  0x6c   : > { %685 = vmatpush3.bf16.msra.mxu0 %v684_v5  ;;  %v365_v11 = vld [vmem:[#allocation7 + $0x8] sm:$0xff]  ;;  %v367_v13 = vld [vmem:[#allocation7 + $0x18] sm:$0xff]  ;;  %v690_v14 = vpack.c.bf16 %v275_v9, %v274_v8  ;;  %v276_v16 = vld [vmem:[#allocation5 + $0x30] sm:$0xff]  ;;  %s459_s16 = scalar_lea.sflag [#allocation4], %s1171_s12  ;;  %s891_s9 = scalar_lea.vmem %s1218_s7, 128 }
  0x6d   : > { %686 = vmatprep.subr.bf16.mxu0 %v968_v0  ;;  %v708_v15 = vpack.c.bf16 %v365_v11, %v364_v10  ;;  %v277_v17 = vld [vmem:[#allocation5 + $0x38] sm:$0xff]  ;;  %v711_v18 = vpack.c.bf16 %v367_v13, %v366_v12  ;;  %v368_v19 = vld [vmem:[#allocation7 + $0x20] sm:$0xff]  ;;  %v369_v20 = vld [vmem:[#allocation7 + $0x28] sm:$0xff]  ;;  %p892_p11 = scmp.ne.s32.totalorder %s1218_s7, %s891_s9  ;;  %p1279_p0 = scmp.ne.s32.totalorder %s1274_s23, 0 }
  0x6e   : > { %v693_v21 = vpack.c.bf16 %v277_v17, %v276_v16  ;;  %v278_v22 = vld [vmem:[#allocation5 + $0x40] sm:$0xff]  ;;  %v279_v23 = vld [vmem:[#allocation5 + $0x48] sm:$0xff]  ;;  %v714_v24 = vpack.c.bf16 %v369_v20, %v368_v19  ;;  %v370_v25 = vld [vmem:[#allocation7 + $0x30] sm:$0xff]  ;;  %s971_s22 = smov [#allocation8]  }
  0x6f   : > { %709 = vmatpush3.bf16.msra.mxu1 %v708_v15  ;;  %v371_v26 = vld [vmem:[#allocation7 + $0x38] sm:$0xff]  ;;  %v696_v27 = vpack.c.bf16 %v279_v23, %v278_v22  ;;  %v280_v28 = vld [vmem:[#allocation5 + $0x50] sm:$0xff]  ;;  %v372_v31 = vld [vmem:[#allocation7 + $0x40] sm:$0xff]  ;;  %p893_p1 = pnand %p892_p11, %p1279_p0  ;;  %s895_s13 = sshll.u32 %s971_s22, 4  ;;  %s896_s13 = int_to_ptr.vmem [resolvable:$false] %s895_s13 }
  0x70   : > { %688 = vmatpush3.bf16.msra.mxu0 %v687_v7  ;;  %710 = vmatprep.subr.bf16.mxu1 %v968_v0  ;;  %v281_v29 = vld [vmem:[#allocation5 + $0x58] sm:$0xff]  ;;  %v717_v30 = vpack.c.bf16 %v371_v26, %v370_v25  ;;  %v373_v32 = vld [vmem:[#allocation7 + $0x48] sm:$0xff]  ;;  %v282_v34 = vld [vmem:[#allocation5 + $0x60] sm:$0xff]  ;;  %s897_s29 = scalar_lea.vmem %s896_s13, 256  ;;  %p898_p7 = scmp.lt.s32.totalorder %s1218_s7, %s896_s13 }
  0x71   : > { %689 = vmatprep.subr.bf16.mxu0 %v968_v0  ;;  %v699_v33 = vpack.c.bf16 %v281_v29, %v280_v28  ;;  %v283_v35 = vld [vmem:[#allocation5 + $0x68] sm:$0xff]  ;;  %v720_v36 = vpack.c.bf16 %v373_v32, %v372_v31  ;;  %v284_v38 = vld [vmem:[#allocation5 + $0x70] sm:$0xff]  ;;  %v285_v39 = vld [vmem:[#allocation5 + $0x78] sm:$0xff]  ;;  %p894_p3 = pneg %p893_p1  ;;  %p899_p9 = scmp.lt.s32.totalorder %s897_s29, %s891_s9 }
  0x72   : > { %v702_v37 = vpack.c.bf16 %v283_v35, %v282_v34  ;;  %v705_v40 = vpack.c.bf16 %v285_v39, %v284_v38  ;;  %v269_v41 = vld [vmem:[%s1177_s17] sm:$0xff]  ;;  %v376_v45 = vld [vmem:[#allocation7 + $0x60] sm:$0xff]  ;;  %v377_v46 = vld [vmem:[#allocation7 + $0x68] sm:$0xff] }
  0x73   : > { %712 = vmatpush3.bf16.msra.mxu1 %v711_v18  ;;  %v374_v42 = vld [vmem:[#allocation7 + $0x50] sm:$0xff]  ;;  %v375_v43 = vld [vmem:[#allocation7 + $0x58] sm:$0xff]  ;;  %v726_v47 = vpack.c.bf16 %v377_v46, %v376_v45  ;;  %p900_p12 = por %p899_p9, %p898_p7 }
  0x74   : > { %691 = vmatpush3.bf16.msra.mxu0 %v690_v14  ;;  %713 = vmatprep.subr.bf16.mxu1 %v968_v0  ;;  %v723_v44 = vpack.c.bf16 %v375_v43, %v374_v42  ;;  %v378_v48 = vld [vmem:[#allocation7 + $0x70] sm:$0xff]  ;;  %v379_v49 = vld [vmem:[#allocation7 + $0x78] sm:$0xff] }
  0x75   : > { %692 = vmatprep.subr.bf16.mxu0 %v968_v0  ;;  %v729_v50 = vpack.c.bf16 %v379_v49, %v378_v48  ;;  %v573_v51 = vld [vmem:[%s1262_s2] ss:$0 sm:$0xff]  ;;  %p901_p2 = pnand %p900_p12, %p894_p3 }
  0x76   : > { %v574_v56 = vld [vmem:[%s1264_s4] ss:$0 sm:$0xff] }
  0x77   : > { %715 = vmatpush3.bf16.msra.mxu1 %v714_v24 }
  0x78   : > { %694 = vmatpush3.bf16.msra.mxu0 %v693_v21  ;;  %716 = vmatprep.subr.bf16.mxu1 %v968_v0 }
  0x79   : > { %695 = vmatprep.subr.bf16.mxu0 %v968_v0 }
  0x7b   : > { %718 = vmatpush3.bf16.msra.mxu1 %v717_v30 }
  0x7c   : > { %697 = vmatpush3.bf16.msra.mxu0 %v696_v27  ;;  %719 = vmatprep.subr.bf16.mxu1 %v968_v0 }
  0x7d   : > { %698 = vmatprep.subr.bf16.mxu0 %v968_v0 }
  0x7f   : > { %721 = vmatpush3.bf16.msra.mxu1 %v720_v36 }
  0x80   : > { %700 = vmatpush3.bf16.msra.mxu0 %v699_v33  ;;  %722 = vmatprep.subr.bf16.mxu1 %v968_v0 }
  0x81   : > { %701 = vmatprep.subr.bf16.mxu0 %v968_v0 }
  0x83   : > { %724 = vmatpush3.bf16.msra.mxu1 %v723_v44 }
  0x84   : > { %703 = vmatpush3.bf16.msra.mxu0 %v702_v37  ;;  %725 = vmatprep.subr.bf16.mxu1 %v968_v0 }
  0x85   : > { %704 = vmatprep.subr.bf16.mxu0 %v968_v0 }
  0x87   : > { %727 = vmatpush3.bf16.msra.mxu1 %v726_v47 }
  0x88   : > { %706 = vmatpush3.bf16.msra.mxu0 %v705_v40  ;;  %728 = vmatprep.subr.bf16.mxu1 %v968_v0 }
  0x8b   : > { %646 = vmatmul.mubr.f32.vlgmr.msra.gmra.mrb[0].mxu0 %v269_v41  ;;  %730 = vmatpush3.bf16.msra.mxu1 %v729_v50 }
 0x15e   : > { %v359_v52 = vpop.f32.mrb[0].mxu0 }
 0x15f   : > { %v360_v53 = vadd.f32 %v573_v51, %v359_v52  ;;  %v647_v54 = vpop.f32.mrb[1].mxu0 }
 0x161   : > { %803 = vtanh.f32 %v360_v53 }
 0x16b   : > { %v804_v55 = vpop.eup %803 }
 0x16c   : > { %681 = vmatmul.mubr.f32.vlgmr.msra.gmra.mrb[0].mxu1 %v804_v55 }
 0x23f   : > { %v453_v57 = vpop.f32.mrb[0].mxu1 }
 0x240   : > { %v454_v58 = vadd.f32 %v574_v56, %v453_v57  ;;  %v682_v59 = vpop.f32.mrb[1].mxu1 }
 0x242   : > { %457 = vst [vmem:[%s268_s28] sm:$0xff] %v454_v58 }
 0x243   : > { %904 = shalt.err (!%p901_p2)
}
 0x244   : > { %s905_s12 = scalar_lea.hbm %s1216_s15, 128  ;;  %s909_s26 = scalar_lea.hbm %s1265_s5, 256 }
 0x245   : > { %p906_p13 = scmp.ne.s32.totalorder %s1216_s15, %s905_s12  ;;  %p910_p4 = scmp.lt.u32.totalorder %s1216_s15, %s1265_s5 }
 0x246   : > { %p911_p5 = scmp.lt.u32.totalorder %s909_s26, %s905_s12  ;;  %p913_p11 = scmp.lt.u32.totalorder %s905_s12, %s1216_s15 }
 0x247   : > { %p907_p6 = pnand %p906_p13, %p1279_p0 }
 0x248   : > { %p912_p8 = por %p911_p5, %p910_p4 }
 0x249   : > { %p908_p10 = pneg %p907_p6 }
 0x24a   : > { %p914_p1 = por %p913_p11, %p912_p8 }
 0x24c   : > { %p915_p3 = pnand %p914_p1, %p908_p10 }
 0x24e   : > { %918 = shalt.err (!%p915_p3)
}
 0x24f   : > { %741 = dma.vmem_to_hbm [thread:$0]  (%p1279_p0), %s1218_s7, 128, %s1216_s15, %s459_s16  }
 0x250 PF: > { %s484_s11 = sand.u32 1, %s949_s18   ;;  %p1280_p7 = scmp.ne.s32.totalorder %s1270_s25, 0 }
 0x251   : > { %p1281_p9 = scmp.ge.s32.totalorder %s961_s21, 2  ;;  %s485_s28 = scalar_lea.sflag [#allocation4], %s484_s11 }
 0x253   : > { %p755_p12 = pnand %p1281_p9, %p1280_p7 }
 0x255   : > { %944 = dma.done.wait (!%p755_p12), %s485_s28, 128  }
 0x256   : > { %946 = vsyncadd (!%p755_p12), %s485_s28, 4294967168  ;;  %p19_p2 = scmp.ge.s32.totalorder %s1112_s14, 4   ;;  %s1282_s18 = smov %s953_s19 }
 0x257   : > { %s1283_s19 = smov %s957_s20  ;;  %s1284_s20 = smov %s1128_s27 }
 0x258   : > { %s1285_s21 = smov %s1112_s14  ;;  %21 = sbr.rel (!%p19_p2) target bundleno = 6 (0x6), region = 93 }
 0x25f   :  { %490 = vsyncpa [#allocation3], 1 }
 0x260   :  { %492 = vsyncpa [#allocation3 + $0x1], 1 }
 0x261   :  { %493 = vsyncpa [#allocation6], 1 }
 0x262   :  { %494 = vsyncpa [#allocation4], 1 }
 0x263   :  { %496 = vsyncpa [#allocation4 + $0x1], 1 }

</bundles_post_ra>
